<compile_context>
chip_gen: v7x
topology: tpu7x:2x2x1
jax: 0.10.0
libtpu: 0.0.40
codegen_flags: <defaults>
</compile_context>

<pallas_src>
import jax
import jax.numpy as jnp
from jax.experimental import pallas as pl
from jax.experimental.pallas import tpu as pltpu

N_STATES = 3          # Pendulum-v0 observation dim
HIDDEN = 128
LANE = 128


def _hardswish(x):
    # PyTorch nn.Hardswish: x * relu6(x + 3) / 6
    return x * jnp.clip(x + 3.0, 0.0, 6.0) * (1.0 / 6.0)


def critic_kernel(xt_ref, w1t_ref, w23t_ref, bpack_ref, b4_ref, o_ref):
    # xt_ref   : (3, TB)        input tile, batch on the lane axis
    # w1t_ref  : (128, 3)       first-layer weight, (out, in)
    # w23t_ref : (2, 128, 128)  stacked 2nd/3rd layer weights, (out, in)
    # bpack_ref: (128, 4)       columns = [b1, b2, b3, w4]
    # b4_ref   : (1,)  SMEM     final bias scalar
    # o_ref    : (1, TB)        lane-dense output row
    xt = xt_ref[...]                       # (3, TB)
    w1t = w1t_ref[...]                     # (128, 3)
    b1 = bpack_ref[:, 0:1]                 # (128, 1)
    b2 = bpack_ref[:, 1:2]
    b3 = bpack_ref[:, 2:3]
    w4 = bpack_ref[:, 3:4]                 # (128, 1) final-layer weight column

    # ---- Layer 1: K=3 "matmul" as three VPU FMAs (keeps the MXU out of it) ----
    h1 = (w1t[:, 0:1] * xt[0:1, :]
          + w1t[:, 1:2] * xt[1:2, :]
          + w1t[:, 2:3] * xt[2:3, :]
          + b1)                            # (128, TB)
    h1 = jnp.maximum(h1, 0.0)              # ReLU

    # ---- Layer 2: 128x128 MXU matmul over the (128, TB) activation slab ----
    h2 = jnp.dot(w23t_ref[0], h1, preferred_element_type=jnp.float32) + b2
    h2 = jnp.maximum(h2, 0.0)              # ReLU

    # ---- Layer 3: 128x128 MXU matmul + Hardswish ----
    z3 = jnp.dot(w23t_ref[1], h2, preferred_element_type=jnp.float32) + b3
    h3 = _hardswish(z3)

    # ---- Layer 4: N=1 head = VPU multiply + sublane reduce -> lane-dense row ----
    o_ref[...] = jnp.sum(h3 * w4, axis=0, keepdims=True) + b4_ref[0]


def _round_up(n, m):
    return ((n + m - 1) // m) * m


def critic_forward(x, params, *, tb=1024):
    """x: (B, N_STATES) float32 -> (B, 1) float32."""
    B = x.shape[0]

    # Batch tile lives on the lane axis: keep it a multiple of 128, capped at `tb`.
    tb = max(LANE, _round_up(tb, LANE))
    TB = min(tb, _round_up(B, LANE))
    padded_B = _round_up(B, TB)
    if padded_B != B:
        x = jnp.pad(x, ((0, padded_B - B), (0, 0)))
    xt = x.T                                                           # (3, padded_B)

    # Consolidated, VMEM-resident operands (all stored (out, in) for the
    # feature-major layout; wrapper-side transposes are layout plumbing).
    w1t = params["w1"].T                                               # (128, 3)
    w23t = jnp.stack([params["w2"].T, params["w3"].T], axis=0)         # (2, 128, 128)
    bpack = jnp.concatenate(
        [params["b1"].T, params["b2"].T, params["b3"].T, params["w4"]],
        axis=1)                                                        # (128, 4)
    b4 = params["b4"].reshape(1)                                       # (1,)

    grid = (padded_B // TB,)

    out = pl.pallas_call(
        critic_kernel,
        out_shape=jax.ShapeDtypeStruct((1, padded_B), jnp.float32),
        grid=grid,
        in_specs=[
            pl.BlockSpec((N_STATES, TB), lambda i: (0, i)),            # x^T: tiled over batch
            pl.BlockSpec((HIDDEN, N_STATES), lambda i: (0, 0)),        # w1^T: VMEM-resident
            pl.BlockSpec((2, HIDDEN, HIDDEN), lambda i: (0, 0, 0)),    # w2^T/w3^T: resident
            pl.BlockSpec((HIDDEN, 4), lambda i: (0, 0)),               # b1/b2/b3/w4: resident
            pl.BlockSpec(memory_space=pltpu.SMEM),                     # b4 scalar
        ],
        out_specs=pl.BlockSpec((1, TB), lambda i: (0, i)),             # lane-dense output
        compiler_params=pltpu.CompilerParams(
            dimension_semantics=("parallel",)),  # shards batch across v7x's 2 TCs
    )(xt, w1t, w23t, bpack, b4)

    return out[0, :B].reshape(B, 1)


def _orthogonal(key, shape, gain):
    """Deterministic orthogonal init (matches torch.nn.init.orthogonal_ semantics)."""
    rows, cols = shape
    n = max(rows, cols)
    a = jax.random.normal(key, (n, n), dtype=jnp.float32)
    q, r = jnp.linalg.qr(a)
    q = q * jnp.sign(jnp.diag(r))        # make decomposition unique
    return gain * q[:rows, :cols]


def make_params(key):
    k1, k2, k3, k4 = jax.random.split(key, 4)

    def linear(k, fan_in, fan_out):
        # PyTorch default Linear init: U(-1/sqrt(fan_in), 1/sqrt(fan_in))
        kw, kb = jax.random.split(k)
        bound = 1.0 / jnp.sqrt(fan_in)
        w = jax.random.uniform(kw, (fan_in, fan_out), jnp.float32, -bound, bound)
        b = jax.random.uniform(kb, (1, fan_out), jnp.float32, -bound, bound)
        return w, b

    w1, b1 = linear(k1, N_STATES, HIDDEN)
    w2, b2 = linear(k2, HIDDEN, HIDDEN)
    w3, b3 = linear(k3, HIDDEN, HIDDEN)
    # last layer: layer_norm(layer, std=0.5) -> orthogonal weight (gain 0.5), bias 1e-6
    # torch weight is (out=1, in=128); ours is (in=128, out=1) -> its transpose.
    w4 = _orthogonal(k4, (1, HIDDEN), gain=0.5).T                      # (128, 1)
    b4 = jnp.full((1, 1), 1e-6, dtype=jnp.float32)

    return dict(w1=w1, b1=b1, w2=w2, b2=b2, w3=w3, b3=b3, w4=w4, b4=b4)


def critic_reference(x, p):
    h = jnp.maximum(x @ p["w1"] + p["b1"], 0.0)
    h = jnp.maximum(h @ p["w2"] + p["b2"], 0.0)
    z = h @ p["w3"] + p["b3"]
    h = _hardswish(z)
    return h @ p["w4"] + p["b4"]


if __name__ == "__main__":
    key = jax.random.PRNGKey(0)
    k_param, k_x = jax.random.split(key)

    params = make_params(k_param)
    batch = 8
    x = jax.random.normal(k_x, (batch, N_STATES), dtype=jnp.float32)

    out = critic_forward(x, params)
    out = jax.block_until_ready(out)

    ref = critic_reference(x, params)
    assert out.shape == (batch, 1)
    assert jnp.allclose(out, ref, atol=1e-5, rtol=1e-4)

    print("KERNEL_OK")
</pallas_src>

<mosaic_0001>
module attributes {stable_mosaic.version = 11 : i64} {
  func.func @critic_kernel(%arg0: i32, %arg1: memref<3x128xf32, #tpu.memory_space<vmem>>, %arg2: memref<128x3xf32, #tpu.memory_space<vmem>>, %arg3: memref<2x128x128xf32, #tpu.memory_space<vmem>>, %arg4: memref<128x4xf32, #tpu.memory_space<vmem>>, %arg5: memref<1xf32, #tpu.memory_space<smem>>, %arg6: memref<1x128xf32, #tpu.memory_space<vmem>>) attributes {dimension_semantics = [#tpu.dimension_semantics<parallel>], iteration_bounds = array<i64: 1>, scalar_prefetch = 0 : i64, scratch_operands = 0 : i64, tpu.core_type = #tpu.core_type<tc>, window_params = [{transform_indices = @transform_0, window_bounds = array<i64: 3, 128>}, {pipeline_mode = #tpu.pipeline_mode<synchronous>, transform_indices = @transform_1, window_bounds = array<i64: 128, 3>}, {pipeline_mode = #tpu.pipeline_mode<synchronous>, transform_indices = @transform_2, window_bounds = array<i64: 2, 128, 128>}, {pipeline_mode = #tpu.pipeline_mode<synchronous>, transform_indices = @transform_3, window_bounds = array<i64: 128, 4>}, {transform_indices = @transform_4, window_bounds = array<i64: 1>}, {transform_indices = @transform_5, window_bounds = array<i64: 1, 128>}]} {
    %c0 = arith.constant 0 : index
    %c0_0 = arith.constant 0 : index
    %0 = vector.load %arg1[%c0, %c0_0] : memref<3x128xf32, #tpu.memory_space<vmem>>, vector<3x128xf32>
    %c0_1 = arith.constant 0 : index
    %c0_2 = arith.constant 0 : index
    %1 = vector.load %arg2[%c0_1, %c0_2] : memref<128x3xf32, #tpu.memory_space<vmem>>, vector<128x3xf32>
    %c0_3 = arith.constant 0 : index
    %c0_4 = arith.constant 0 : index
    %2 = vector.load %arg4[%c0_3, %c0_4] : memref<128x4xf32, #tpu.memory_space<vmem>>, vector<128x1xf32>
    %c0_5 = arith.constant 0 : index
    %c1 = arith.constant 1 : index
    %3 = vector.load %arg4[%c0_5, %c1] : memref<128x4xf32, #tpu.memory_space<vmem>>, vector<128x1xf32>
    %c0_6 = arith.constant 0 : index
    %c2 = arith.constant 2 : index
    %4 = vector.load %arg4[%c0_6, %c2] : memref<128x4xf32, #tpu.memory_space<vmem>>, vector<128x1xf32>
    %c0_7 = arith.constant 0 : index
    %c3 = arith.constant 3 : index
    %5 = vector.load %arg4[%c0_7, %c3] : memref<128x4xf32, #tpu.memory_space<vmem>>, vector<128x1xf32>
    %6 = vector.extract_strided_slice %1 {offsets = [0, 0], sizes = [128, 1], strides = [1, 1]} : vector<128x3xf32> to vector<128x1xf32>
    %7 = vector.extract_strided_slice %0 {offsets = [0, 0], sizes = [1, 128], strides = [1, 1]} : vector<3x128xf32> to vector<1x128xf32>
    %8 = vector.broadcast %6 : vector<128x1xf32> to vector<128x128xf32>
    %9 = vector.broadcast %7 : vector<1x128xf32> to vector<128x128xf32>
    %10 = arith.mulf %8, %9 : vector<128x128xf32>
    %11 = vector.extract_strided_slice %1 {offsets = [0, 1], sizes = [128, 1], strides = [1, 1]} : vector<128x3xf32> to vector<128x1xf32>
    %12 = vector.extract_strided_slice %0 {offsets = [1, 0], sizes = [1, 128], strides = [1, 1]} : vector<3x128xf32> to vector<1x128xf32>
    %13 = vector.broadcast %11 : vector<128x1xf32> to vector<128x128xf32>
    %14 = vector.broadcast %12 : vector<1x128xf32> to vector<128x128xf32>
    %15 = arith.mulf %13, %14 : vector<128x128xf32>
    %16 = arith.addf %10, %15 : vector<128x128xf32>
    %17 = vector.extract_strided_slice %1 {offsets = [0, 2], sizes = [128, 1], strides = [1, 1]} : vector<128x3xf32> to vector<128x1xf32>
    %18 = vector.extract_strided_slice %0 {offsets = [2, 0], sizes = [1, 128], strides = [1, 1]} : vector<3x128xf32> to vector<1x128xf32>
    %19 = vector.broadcast %17 : vector<128x1xf32> to vector<128x128xf32>
    %20 = vector.broadcast %18 : vector<1x128xf32> to vector<128x128xf32>
    %21 = arith.mulf %19, %20 : vector<128x128xf32>
    %22 = arith.addf %16, %21 : vector<128x128xf32>
    %23 = vector.broadcast %2 : vector<128x1xf32> to vector<128x128xf32>
    %24 = arith.addf %22, %23 : vector<128x128xf32>
    %cst = arith.constant 0.000000e+00 : f32
    %25 = vector.broadcast %cst : f32 to vector<128x128xf32>
    %26 = arith.maximumf %24, %25 : vector<128x128xf32>
    %c0_8 = arith.constant 0 : index
    %c0_9 = arith.constant 0 : index
    %c0_10 = arith.constant 0 : index
    %27 = vector.load %arg3[%c0_8, %c0_9, %c0_10] : memref<2x128x128xf32, #tpu.memory_space<vmem>>, vector<1x128x128xf32>
    %28 = vector.shape_cast %27 : vector<1x128x128xf32> to vector<128x128xf32>
    %cst_11 = arith.constant dense<0.000000e+00> : vector<128x128xf32>
    %29 = tpu.matmul %28, %26, %cst_11 {dimension_numbers = #tpu.dot_dimension_numbers<[1], [0], [0], [1], [0, 0, 1, 1], [], []>} : vector<128x128xf32>, vector<128x128xf32>, vector<128x128xf32> -> vector<128x128xf32>
    %30 = vector.broadcast %3 : vector<128x1xf32> to vector<128x128xf32>
    %31 = arith.addf %29, %30 : vector<128x128xf32>
    %cst_12 = arith.constant 0.000000e+00 : f32
    %32 = vector.broadcast %cst_12 : f32 to vector<128x128xf32>
    %33 = arith.maximumf %31, %32 : vector<128x128xf32>
    %c1_13 = arith.constant 1 : index
    %c0_14 = arith.constant 0 : index
    %c0_15 = arith.constant 0 : index
    %34 = vector.load %arg3[%c1_13, %c0_14, %c0_15] : memref<2x128x128xf32, #tpu.memory_space<vmem>>, vector<1x128x128xf32>
    %35 = vector.shape_cast %34 : vector<1x128x128xf32> to vector<128x128xf32>
    %cst_16 = arith.constant dense<0.000000e+00> : vector<128x128xf32>
    %36 = tpu.matmul %35, %33, %cst_16 {dimension_numbers = #tpu.dot_dimension_numbers<[1], [0], [0], [1], [0, 0, 1, 1], [], []>} : vector<128x128xf32>, vector<128x128xf32>, vector<128x128xf32> -> vector<128x128xf32>
    %37 = vector.broadcast %4 : vector<128x1xf32> to vector<128x128xf32>
    %38 = arith.addf %36, %37 : vector<128x128xf32>
    %cst_17 = arith.constant 3.000000e+00 : f32
    %39 = vector.broadcast %cst_17 : f32 to vector<128x128xf32>
    %40 = arith.addf %38, %39 : vector<128x128xf32>
    %cst_18 = arith.constant 0.000000e+00 : f32
    %cst_19 = arith.constant 6.000000e+00 : f32
    %41 = vector.broadcast %cst_18 : f32 to vector<128x128xf32>
    %42 = arith.maximumf %41, %40 : vector<128x128xf32>
    %43 = vector.broadcast %cst_19 : f32 to vector<128x128xf32>
    %44 = arith.minimumf %43, %42 : vector<128x128xf32>
    %45 = arith.mulf %38, %44 : vector<128x128xf32>
    %cst_20 = arith.constant 0.166666672 : f32
    %46 = vector.broadcast %cst_20 : f32 to vector<128x128xf32>
    %47 = arith.mulf %45, %46 : vector<128x128xf32>
    %48 = vector.broadcast %5 : vector<128x1xf32> to vector<128x128xf32>
    %49 = arith.mulf %47, %48 : vector<128x128xf32>
    %cst_21 = arith.constant dense<0.000000e+00> : vector<128xf32>
    %50 = vector.multi_reduction <add>, %49, %cst_21 [0] : vector<128x128xf32> to vector<128xf32>
    %51 = vector.shape_cast %50 : vector<128xf32> to vector<1x128xf32>
    %c0_22 = arith.constant 0 : index
    %52 = memref.load %arg5[%c0_22] : memref<1xf32, #tpu.memory_space<smem>>
    %53 = vector.broadcast %52 : f32 to vector<1x128xf32>
    %54 = arith.addf %51, %53 : vector<1x128xf32>
    %c0_23 = arith.constant 0 : index
    %c0_24 = arith.constant 0 : index
    %55 = vector.load %arg6[%c0_23, %c0_24] : memref<1x128xf32, #tpu.memory_space<vmem>>, vector<1x128xf32>
    tpu.vector_store %arg6[%c0_23, %c0_24], %54 {strides = array<i32>} : memref<1x128xf32, #tpu.memory_space<vmem>>, vector<1x128xf32>,
    return
  }
  func.func @transform_0(%arg0: i32) -> (i32, i32) {
    %c0_i32 = arith.constant 0 : i32
    %c0_i32_0 = arith.constant 0 : i32
    return %c0_i32, %arg0 : i32, i32
  }
  func.func @transform_1(%arg0: i32) -> (i32, i32) {
    %c0_i32 = arith.constant 0 : i32
    %c0_i32_0 = arith.constant 0 : i32
    %c0_i32_1 = arith.constant 0 : i32
    return %c0_i32, %c0_i32_0 : i32, i32
  }
  func.func @transform_2(%arg0: i32) -> (i32, i32, i32) {
    %c0_i32 = arith.constant 0 : i32
    %c0_i32_0 = arith.constant 0 : i32
    %c0_i32_1 = arith.constant 0 : i32
    %c0_i32_2 = arith.constant 0 : i32
    return %c0_i32, %c0_i32_0, %c0_i32_1 : i32, i32, i32
  }
  func.func @transform_3(%arg0: i32) -> (i32, i32) {
    %c0_i32 = arith.constant 0 : i32
    %c0_i32_0 = arith.constant 0 : i32
    %c0_i32_1 = arith.constant 0 : i32
    return %c0_i32, %c0_i32_0 : i32, i32
  }
  func.func @transform_4(%arg0: i32) -> i32 {
    %c0_i32 = arith.constant 0 : i32
    %c0_i32_0 = arith.constant 0 : i32
    return %c0_i32 : i32
  }
  func.func @transform_5(%arg0: i32) -> (i32, i32) {
    %c0_i32 = arith.constant 0 : i32
    %c0_i32_0 = arith.constant 0 : i32
    return %c0_i32, %arg0 : i32, i32
  }
}

</mosaic_0001>

<bundles_post_ra>
// kernel: tpu_custom_call.1
= control target key start
LH: loop header
LB: loop body
LE: loop exit
PB: predicated region body
PF: predicated region fallthrough
CT: control target
= control target key end

     0   :  { %v1458_v1 = vmov 2   ;;  %v1459_v2 = vmov 1   ;;  %s1970_s0 = inlined_call_operand.vmem [shape: f32[3,128], index: 0, kind: input, shape index: {}]   ;;  %s1971_s1 = inlined_call_operand.vmem [shape: f32[128,3], index: 1, kind: input, shape index: {}]   ;;  %s1972_s2 = inlined_call_operand.vmem [shape: f32[2,128,128], index: 2, kind: input, shape index: {}]   ;;  %s1973_s3 = inlined_call_operand.vmem [shape: f32[128,4], index: 3, kind: input, shape index: {}]   ;;  %s1974_s4 = inlined_call_operand.<no memory space> [shape: f32[1], index: 4, kind: input, shape index: {}]   ;;  %s1975_s5 = inlined_call_operand.hbm [shape: f32[1,128], index: 5, kind: output, shape index: {}]  }
   0x1   :  { %v23_v0 = vld [vmem:[%s1971_s1] sm:$0xff]  ;;  %1395 = vset.pattern.permute.xlu0 %v1458_v1  ;;  %1394 = vset.pattern.permute.xlu1 %v1459_v2  ;;  %v25_v3 = vld [vmem:[%s1971_s1 + $0x10] sm:$0xff]  ;;  %v24_v4 = vld [vmem:[%s1971_s1 + $0x8] sm:$0xff] }
   0x2   :  { %256 = vperm.xlu0 %1395, %v23_v0   ;;  %156 = vperm.xlu1 %1394, %v23_v0   ;;  %v28_v5 = vld [vmem:[%s1971_s1 + $0x28] sm:$0xff] }
   0x6   :  { %264 = vperm.xlu0 %1395, %v25_v3   ;;  %160 = vperm.xlu1 %1394, %v24_v4  }
   0x7   :  { %11 = vsyncpa [#allocation4], 0  ;;  %v27_v6 = vld [vmem:[%s1971_s1 + $0x20] sm:$0xff]  ;;  %v1460_v7 = vmov 0   ;;  %v30_v8 = vld [vmem:[%s1971_s1 + $0x38] sm:$0xff]  ;;  %v135_v44 = vlaneseq  ;;  %s1462_s15 = smov [#allocation3]  }
   0x8   :  { %v1520_v9 = vld [vmem:[%s1971_s1 + $0x48] sm:$0xff]  ;;  %v26_v10 = vld [vmem:[%s1971_s1 + $0x18] sm:$0xff]  ;;  %v1547_v14 = vld [vmem:[%s1973_s3] sm:$0xff]  ;;  %s1125_s16 = sshll.u32 %s1462_s15, 4  ;;  %s1126_s16 = int_to_ptr.vmem [resolvable:$true] %s1125_s16 }
   0x9   :  { %v1529_v11 = vld [vmem:[%s1971_s1 + $0x58] sm:$0xff]  ;;  %v1535_v12 = vld [vmem:[%s1971_s1 + $0x68] sm:$0xff]  ;;  %v29_v16 = vld [vmem:[%s1971_s1 + $0x30] sm:$0xff]  ;;  %v136_v48 = vshrl.u32 %v135_v44, 7  ;;  %s1434_s17 = scalar_lea.vmem %s1126_s16, 16  ;;  %s1438_s18 = scalar_lea.vmem %s1126_s16, 32 }
   0xa   :  { %276 = vperm.xlu0 %1395, %v28_v5   ;;  %1396 = vset.pattern.permute.xlu1 %v1458_v1  ;;  %v1542_v13 = vld [vmem:[%s1971_s1 + $0x78] sm:$0xff]  ;;  %v1557_v15 = vld [vmem:[%s1973_s3 + $0x8] sm:$0xff]  ;;  %v1567_v17 = vld [vmem:[%s1973_s3 + $0x10] sm:$0xff]  ;;  %p1435_p0 = scmp.ne.s32.totalorder %s1126_s16, %s1434_s17  ;;  %p1439_p1 = scmp.lt.s32.totalorder %s1126_s16, %s1126_s16 }
   0xb   :  { %260 = vperm.xlu1 %1396, %v24_v4   ;;  %v1573_v18 = vld [vmem:[%s1973_s3 + $0x20] sm:$0xff]  ;;  %v1579_v19 = vld [vmem:[%s1973_s3 + $0x18] sm:$0xff]  ;;  %v1587_v20 = vld [vmem:[%s1973_s3 + $0x30] sm:$0xff]  ;;  %v221_v51 = vsub.s32 1, %v136_v48  ;;  %v137_v53 = vsub.s32 0, %v136_v48  ;;  %v321_v57 = vsub.s32 2, %v136_v48  ;;  %p1440_p2 = scmp.lt.s32.totalorder %s1438_s18, %s1434_s17 }
   0xc   :  { %v1595_v21 = vld [vmem:[%s1973_s3 + $0x40] sm:$0xff]  ;;  %v1603_v22 = vld [vmem:[%s1973_s3 + $0x50] sm:$0xff]  ;;  %v1608_v23 = vld [vmem:[%s1973_s3 + $0x28] sm:$0xff] }
   0xd   :  { %v31_v24 = vld [vmem:[%s1971_s1 + $0x40] sm:$0xff]  ;;  %v1627_v26 = vld [vmem:[%s1973_s3 + $0x78] sm:$0xff]  ;;  %v33_v28 = vld [vmem:[%s1971_s1 + $0x50] sm:$0xff]  ;;  %p1441_p3 = por %p1440_p2, %p1439_p1 }
   0xe   :  { %1403 = vset.pattern.permute.xlu0 %v1459_v2  ;;  %v1620_v25 = vld [vmem:[%s1973_s3 + $0x60] sm:$0xff]  ;;  %v1637_v27 = vld [vmem:[%s1973_s3 + $0x38] sm:$0xff]  ;;  %v1654_v29 = vld [vmem:[%s1973_s3 + $0x70] sm:$0xff] }
   0xf   :  { %172 = vperm.xlu0 %1403, %v27_v6   ;;  %1397 = vset.pattern.permute.xlu1 %v1460_v7  ;;  %v1661_v30 = vld [vmem:[%s1973_s3 + $0x48] sm:$0xff]  ;;  %v35_v33 = vld [vmem:[%s1971_s1 + $0x60] sm:$0xff]  ;;  %v1684_v43 = vld [vmem:[%s1973_s3 + $0x58] sm:$0xff]  ;;  %p1442_p4 = pnand %p1441_p3, %p1435_p0 }
  0x10   :  { %67 = vperm.xlu1 %1397, %v25_v3   ;;  %v37_v47 = vld [vmem:[%s1971_s1 + $0x70] sm:$0xff]  ;;  %v22_v52 = vld [vmem:[%s1970_s0] sm:$0x7] }
  0x11   :  { %v1701_v56 = vrot.slane %v22_v52, %v221_v51  ;;  %v1703_v58 = vrot.slane %v22_v52, %v137_v53  ;;  %v1709_v62 = vrot.slane %v22_v52, %v321_v57 }
  0x13   :  { %184 = vperm.xlu0 %1403, %v30_v8  }
  0x14   :  { %1398 = vset.pattern.permute.xlu1 %v1459_v2 }
  0x15   :  { %164 = vperm.xlu1 %1398, %v25_v3  }
  0x17   :  { %192 = vperm.xlu0 %1403, %v1520_v9  }
  0x19   :  { %168 = vperm.xlu1 %1398, %v26_v10  }
  0x1b   :  { %200 = vperm.xlu0 %1403, %v1529_v11  }
  0x1d   :  { %1399 = vset.pattern.permute.xlu1 %v1458_v1 }
  0x1e   :  { %268 = vperm.xlu1 %1399, %v26_v10  }
  0x1f   :  { %208 = vperm.xlu0 %1403, %v1535_v12  }
  0x22   :  { %1400 = vset.pattern.permute.xlu1 %v1460_v7 }
  0x23   :  { %216 = vperm.xlu0 %1403, %v1542_v13   ;;  %357 = vperm.xlu1 %1400, %v1547_v14  }
  0x27   :  { %1418 = vset.pattern.permute.xlu0 %v1460_v7  ;;  %77 = vperm.xlu1 %1400, %v27_v6  }
  0x28   :  { %57 = vperm.xlu0 %1418, %v23_v0  }
  0x2b   :  { %82 = vperm.xlu1 %1400, %v28_v5  }
  0x2c   :  { %62 = vperm.xlu0 %1418, %v24_v4  }
  0x2f   :  { %1401 = vset.pattern.permute.xlu1 %v1459_v2 }
  0x30   :  { %72 = vperm.xlu0 %1418, %v26_v10   ;;  %176 = vperm.xlu1 %1401, %v28_v5  }
  0x34   :  { %362 = vperm.xlu0 %1418, %v1557_v15   ;;  %1402 = vset.pattern.permute.xlu1 %v1458_v1 }
  0x35   :  { %272 = vperm.xlu1 %1402, %v27_v6  }
  0x38   :  { %87 = vperm.xlu0 %1418, %v29_v16  }
  0x39   :  { %1404 = vset.pattern.permute.xlu1 %v1460_v7 }
  0x3a   :  { %367 = vperm.xlu1 %1404, %v1567_v17  }
  0x3c   :  { %377 = vperm.xlu0 %1418, %v1573_v18  }
  0x3e   :  { %372 = vperm.xlu1 %1404, %v1579_v19  }
  0x40   :  { %102 = vperm.xlu0 %1418, %v1520_v9  }
  0x42   :  { %92 = vperm.xlu1 %1404, %v30_v8  }
  0x44   :  { %387 = vperm.xlu0 %1418, %v1587_v20  }
  0x46   :  { %1405 = vset.pattern.permute.xlu1 %v1459_v2 }
  0x47   :  { %180 = vperm.xlu1 %1405, %v29_v16  }
  0x48   :  { %112 = vperm.xlu0 %1418, %v1529_v11  }
  0x4b   :  { %1406 = vset.pattern.permute.xlu1 %v1458_v1 }
  0x4c   :  { %280 = vperm.xlu1 %1406, %v29_v16   ;;  %397 = vperm.xlu0 %1418, %v1595_v21  }
  0x50   :  { %284 = vperm.xlu1 %1406, %v30_v8   ;;  %122 = vperm.xlu0 %1418, %v1535_v12  }
  0x54   :  { %1407 = vset.pattern.permute.xlu1 %v1460_v7  ;;  %407 = vperm.xlu0 %1418, %v1603_v22  }
  0x55   :  { %382 = vperm.xlu1 %1407, %v1608_v23  }
  0x58   :  { %132 = vperm.xlu0 %1418, %v1542_v13  }
  0x59   :  { %97 = vperm.xlu1 %1407, %v31_v24  }
  0x5c   :  { %417 = vperm.xlu0 %1418, %v1620_v25  }
  0x5d   :  { %1408 = vset.pattern.permute.xlu1 %v1459_v2 }
  0x5e   :  { %188 = vperm.xlu1 %1408, %v31_v24  }
  0x60   :  { %432 = vperm.xlu0 %1418, %v1627_v26  }
  0x62   :  { %1409 = vset.pattern.permute.xlu1 %v1458_v1 }
  0x63   :  { %288 = vperm.xlu1 %1409, %v31_v24  }
  0x64   :  { %1422 = vset.pattern.permute.xlu0 %v1459_v2 }
  0x65   :  { %488 = vperm.xlu0 %1422, %v1557_v15  }
  0x67   :  { %292 = vperm.xlu1 %1409, %v1520_v9  }
  0x69   :  { %500 = vperm.xlu0 %1422, %v1573_v18  }
  0x6b   :  { %1410 = vset.pattern.permute.xlu1 %v1460_v7 }
  0x6c   :  { %392 = vperm.xlu1 %1410, %v1637_v27  }
  0x6d   :  { %508 = vperm.xlu0 %1422, %v1587_v20  }
  0x70   :  { %107 = vperm.xlu1 %1410, %v33_v28  }
  0x71   :  { %516 = vperm.xlu0 %1422, %v1595_v21  }
  0x74   :  { %1411 = vset.pattern.permute.xlu1 %v1459_v2 }
  0x75   :  { %196 = vperm.xlu1 %1411, %v33_v28   ;;  %524 = vperm.xlu0 %1422, %v1603_v22  }
  0x79   :  { %1412 = vset.pattern.permute.xlu1 %v1458_v1  ;;  %532 = vperm.xlu0 %1422, %v1620_v25  }
  0x7a   :  { %296 = vperm.xlu1 %1412, %v33_v28  }
  0x7d   :  { %540 = vperm.xlu0 %1422, %v1654_v29  }
  0x7e   :  { %300 = vperm.xlu1 %1412, %v1529_v11   ;;  %v1719_v11 = vld [vmem:[%s1973_s3 + $0x68] sm:$0xff] }
  0x81   :  { %v157_v31 = vpop.permute.xlu1 %156  ;;  %v257_v32 = vpop.permute.xlu0 %256 }
  0x82   :  { %1413 = vset.pattern.permute.xlu1 %v1460_v7  ;;  %v223_v61 = vmul.f32 %v1701_v56, %v157_v31  ;;  %v323_v0 = vmul.f32 %v1709_v62, %v257_v32 }
  0x83   :  { %402 = vperm.xlu1 %1413, %v1661_v30  }
  0x85   :  { %v161_v34 = vpop.permute.xlu1 %160  ;;  %v1668_v35 = vpop.permute.xlu0 %264 }
  0x86   :  { %v224_v6 = vmul.f32 %v1701_v56, %v161_v34  ;;  %v325_v48 = vmul.f32 %v1709_v62, %v1668_v35 }
  0x87   :  { %117 = vperm.xlu1 %1413, %v35_v33  }
  0x89   :  { %v1670_v36 = vpop.permute.xlu0 %276 }
  0x8a   :  { %v261_v37 = vpop.permute.xlu1 %260 }
  0x8b   :  { %1414 = vset.pattern.permute.xlu1 %v1459_v2  ;;  %v324_v24 = vmul.f32 %v1709_v62, %v261_v37 }
  0x8c   :  { %204 = vperm.xlu1 %1414, %v35_v33  }
  0x8e   :  { %v1673_v38 = vpop.permute.xlu0 %172 }
  0x8f   :  { %v68_v39 = vpop.permute.xlu1 %67 }
  0x90   :  { %1415 = vset.pattern.permute.xlu1 %v1458_v1 }
  0x91   :  { %304 = vperm.xlu1 %1415, %v35_v33   ;;  %v141_v33 = vmul.f32 %v1703_v58, %v68_v39 }
  0x92   :  { %v1676_v40 = vpop.permute.xlu0 %184 }
  0x94   :  { %v165_v41 = vpop.permute.xlu1 %164 }
  0x95   :  { %308 = vperm.xlu1 %1415, %v1535_v12   ;;  %v225_v28 = vmul.f32 %v1701_v56, %v165_v41 }
  0x96   :  { %v1679_v42 = vpop.permute.xlu0 %192 }
  0x97   :  { %v241_v37 = vadd.f32 %v225_v28, %v141_v33 }
  0x98   :  { %v169_v45 = vpop.permute.xlu1 %168 }
  0x99   :  { %1416 = vset.pattern.permute.xlu1 %v1460_v7  ;;  %v341_v57 = vadd.f32 %v325_v48, %v241_v37 }
  0x9a   :  { %412 = vperm.xlu1 %1416, %v1684_v43   ;;  %v1688_v46 = vpop.permute.xlu0 %200 }
  0x9d   :  { %v269_v49 = vpop.permute.xlu1 %268 }
  0x9e   :  { %127 = vperm.xlu1 %1416, %v37_v47   ;;  %v1693_v50 = vpop.permute.xlu0 %208  ;;  %v326_v39 = vmul.f32 %v1709_v62, %v269_v49 }
  0xa2   :  { %1417 = vset.pattern.permute.xlu1 %v1459_v2  ;;  %v358_v54 = vpop.permute.xlu1 %357  ;;  %v1699_v55 = vpop.permute.xlu0 %216 }
  0xa3   :  { %212 = vperm.xlu1 %1417, %v37_v47  }
  0xa6   :  { %v1705_v59 = vpop.permute.xlu1 %77 }
  0xa7   :  { %v58_v60 = vpop.permute.xlu0 %57  ;;  %1419 = vset.pattern.permute.xlu1 %v1458_v1 }
  0xa8   :  { %v139_v63 = vmul.f32 %v1703_v58, %v58_v60  ;;  %312 = vperm.xlu1 %1419, %v37_v47  }
  0xaa   :  { %v239_v3 = vadd.f32 %v223_v61, %v139_v63  ;;  %v83_v4 = vpop.permute.xlu1 %82 }
  0xab   :  { %v63_v5 = vpop.permute.xlu0 %62 }
  0xac   :  { %v140_v8 = vmul.f32 %v1703_v58, %v63_v5  ;;  %316 = vperm.xlu1 %1419, %v1542_v13   ;;  %v339_v9 = vadd.f32 %v323_v0, %v239_v3 }
  0xae   :  { %v240_v10 = vadd.f32 %v224_v6, %v140_v8  ;;  %v435_v32 = vadd.f32 %v358_v54, %v339_v9  ;;  %v227_v8 = vmul.f32 %v1701_v56, %v1673_v38  ;;  %v143_v9 = vmul.f32 %v1703_v58, %v1705_v59 }
  0xaf   :  { %v73_v12 = vpop.permute.xlu0 %72  ;;  %v177_v16 = vpop.permute.xlu1 %176 }
  0xb0   :  { %1420 = vset.pattern.permute.xlu1 %v1460_v7  ;;  %v340_v31 = vadd.f32 %v324_v24, %v240_v10  ;;  %v142_v34 = vmul.f32 %v1703_v58, %v73_v12  ;;  %v226_v7 = vmul.f32 %v1701_v56, %v169_v45  ;;  %v451_v52 = vmax.f32 %v435_v32, 0.0  ;;  %v467_v45 = vld [vmem:[%s1972_s2] sm:$0xff] }
  0xb1   :  { %422 = vperm.xlu1 %1420, %v1719_v11   ;;  %1245 = vmatprep.mubr.f32.mxu0 %v467_v45  ;;  %v228_v10 = vmul.f32 %v1701_v56, %v177_v16  ;;  %v144_v24 = vmul.f32 %v1703_v58, %v83_v4  ;;  %v243_v32 = vadd.f32 %v227_v8, %v143_v9 }
  0xb2   :  { %v242_v41 = vadd.f32 %v226_v7, %v142_v34 }
  0xb3   :  { %v363_v13 = vpop.permute.xlu0 %362 }
  0xb4   :  { %v436_v44 = vadd.f32 %v363_v13, %v340_v31  ;;  %v273_v47 = vpop.permute.xlu1 %272  ;;  %v342_v60 = vadd.f32 %v326_v39, %v242_v41  ;;  %v328_v31 = vmul.f32 %v1709_v62, %v1670_v36  ;;  %v244_v13 = vadd.f32 %v228_v10, %v144_v24 }
  0xb5   :  { %427 = vperm.xlu1 %1420, %v1654_v29   ;;  %v327_v28 = vmul.f32 %v1709_v62, %v273_v47  ;;  %v230_v39 = vmul.f32 %v1701_v56, %v1676_v40  ;;  %v232_v24 = vmul.f32 %v1701_v56, %v1679_v42 }
  0xb6   :  { %v452_v51 = vmax.f32 %v436_v44, 0.0  ;;  %v344_v44 = vadd.f32 %v328_v31, %v244_v13 }
  0xb7   :  { %v88_v6 = vpop.permute.xlu0 %87  ;;  %v343_v38 = vadd.f32 %v327_v28, %v243_v32 }
  0xb8   :  { %v1325_v53 = vpack.c.bf16 %v452_v51, %v451_v52  ;;  %v145_v51 = vmul.f32 %v1703_v58, %v88_v6 }
  0xb9   :  { %v368_v54 = vpop.permute.xlu1 %367  ;;  %1421 = vset.pattern.permute.xlu1 %v1459_v2 }
  0xba   :  { %1326 = vmatprep.subr.bf16.mxu0 %v1325_v53  ;;  %484 = vperm.xlu1 %1421, %v1547_v14   ;;  %v437_v35 = vadd.f32 %v368_v54, %v341_v57 }
  0xbb   :  { %1328 = vmatpush3.bf16.msra.mxu0 %v1325_v53  ;;  %v378_v34 = vpop.permute.xlu0 %377 }
  0xbc   :  { %v453_v0 = vmax.f32 %v437_v35, 0.0  ;;  %v439_v59 = vadd.f32 %v378_v34, %v343_v38 }
  0xbd   :  { %v373_v61 = vpop.permute.xlu1 %372 }
  0xbe   :  { %v438_v63 = vadd.f32 %v373_v61, %v342_v60  ;;  %492 = vperm.xlu1 %1421, %v1567_v17   ;;  %v455_v4 = vmax.f32 %v439_v59, 0.0 }
  0xbf   :  { %v103_v41 = vpop.permute.xlu0 %102 }
  0xc0   :  { %v454_v2 = vmax.f32 %v438_v63, 0.0  ;;  %v148_v28 = vmul.f32 %v1703_v58, %v103_v41 }
  0xc1   :  { %v93_v3 = vpop.permute.xlu1 %92 }
  0xc2   :  { %v1329_v49 = vpack.c.bf16 %v454_v2, %v453_v0  ;;  %496 = vperm.xlu1 %1421, %v1579_v19   ;;  %v146_v57 = vmul.f32 %v1703_v58, %v93_v3  ;;  %v248_v38 = vadd.f32 %v232_v24, %v148_v28 }
  0xc3   :  { %v388_v63 = vpop.permute.xlu0 %387 }
  0xc4   :  { %1330 = vmatprep.subr.bf16.mxu0 %v1329_v49  ;;  %v246_v0 = vadd.f32 %v230_v39, %v146_v57 }
  0xc5   :  { %1332 = vmatpush3.bf16.msra.mxu0 %v1329_v49 }
  0xc6   :  { %v181_v5 = vpop.permute.xlu1 %180  ;;  %504 = vperm.xlu1 %1421, %v1608_v23  }
  0xc7   :  { %v229_v52 = vmul.f32 %v1701_v56, %v181_v5 }
  0xc9   :  { %v245_v35 = vadd.f32 %v229_v52, %v145_v51 }
  0xca   :  { %512 = vperm.xlu1 %1421, %v1637_v27  }
  0xcb   :  { %v281_v12 = vpop.permute.xlu1 %280 }
  0xcc   :  { %v329_v53 = vmul.f32 %v1709_v62, %v281_v12 }
  0xce   :  { %520 = vperm.xlu1 %1421, %v1661_v30   ;;  %v345_v60 = vadd.f32 %v329_v53, %v245_v35 }
  0xcf   :  { %v285_v33 = vpop.permute.xlu1 %284 }
  0xd0   :  { %v330_v45 = vmul.f32 %v1709_v62, %v285_v33  ;;  %v441_v2 = vadd.f32 %v388_v63, %v345_v60  ;;  %v113_v33 = vpop.permute.xlu0 %112  ;;  %v234_v60 = vmul.f32 %v1701_v56, %v1688_v46 }
  0xd2   :  { %528 = vperm.xlu1 %1421, %v1684_v43   ;;  %v346_v49 = vadd.f32 %v330_v45, %v246_v0  ;;  %v457_v8 = vmax.f32 %v441_v2, 0.0  ;;  %v150_v45 = vmul.f32 %v1703_v58, %v113_v33 }
  0xd4   :  { %v383_v16 = vpop.permute.xlu1 %382 }
  0xd5   :  { %v440_v48 = vadd.f32 %v383_v16, %v344_v44 }
  0xd6   :  { %536 = vperm.xlu1 %1421, %v1719_v11  }
  0xd7   :  { %v456_v47 = vmax.f32 %v440_v48, 0.0  ;;  %v398_v48 = vpop.permute.xlu0 %397 }
  0xd8   :  { %v98_v37 = vpop.permute.xlu1 %97 }
  0xd9   :  { %v1333_v7 = vpack.c.bf16 %v456_v47, %v455_v4  ;;  %v147_v31 = vmul.f32 %v1703_v58, %v98_v37 }
  0xda   :  { %544 = vperm.xlu1 %1421, %v1627_v26  }
  0xdb   :  { %1334 = vmatprep.subr.bf16.mxu0 %v1333_v7  ;;  %v123_v35 = vpop.permute.xlu0 %122 }
  0xdc   :  { %1336 = vmatpush3.bf16.msra.mxu0 %v1333_v7 }
  0xdd   :  { %v189_v36 = vpop.permute.xlu1 %188 }
  0xde   :  { %1423 = vset.pattern.permute.xlu1 %v1458_v1  ;;  %v231_v12 = vmul.f32 %v1701_v56, %v189_v36 }
  0xdf   :  { %730 = vperm.xlu1 %1423, %v1557_v15  }
  0xe0   :  { %v247_v34 = vadd.f32 %v231_v12, %v147_v31 }
  0xe2   :  { %v289_v54 = vpop.permute.xlu1 %288 }
  0xe3   :  { %734 = vperm.xlu1 %1423, %v1567_v17   ;;  %v331_v32 = vmul.f32 %v1709_v62, %v289_v54 }
  0xe5   :  { %v347_v59 = vadd.f32 %v331_v32, %v247_v34 }
  0xe6   :  { %v293_v61 = vpop.permute.xlu1 %292 }
  0xe7   :  { %742 = vperm.xlu1 %1423, %v1573_v18   ;;  %v332_v44 = vmul.f32 %v1709_v62, %v293_v61  ;;  %v443_v4 = vadd.f32 %v398_v48, %v347_v59  ;;  %v238_v59 = vmul.f32 %v1701_v56, %v1699_v55 }
  0xe9   :  { %v348_v47 = vadd.f32 %v332_v44, %v248_v38  ;;  %v459_v42 = vmax.f32 %v443_v4, 0.0  ;;  %v236_v38 = vmul.f32 %v1701_v56, %v1693_v50  ;;  %v152_v44 = vmul.f32 %v1703_v58, %v123_v35 }
  0xeb   :  { %v393_v5 = vpop.permute.xlu1 %392  ;;  %750 = vperm.xlu1 %1423, %v1587_v20  }
  0xec   :  { %v442_v6 = vadd.f32 %v393_v5, %v346_v49  ;;  %v250_v49 = vadd.f32 %v234_v60, %v150_v45  ;;  %v408_v5 = vpop.permute.xlu0 %407 }
  0xee   :  { %v458_v9 = vmax.f32 %v442_v6, 0.0 }
  0xef   :  { %v108_v40 = vpop.permute.xlu1 %107 }
  0xf0   :  { %v1337_v10 = vpack.c.bf16 %v458_v9, %v457_v8  ;;  %v149_v54 = vmul.f32 %v1703_v58, %v108_v40  ;;  %v133_v31 = vpop.permute.xlu0 %132 }
  0xf2   :  { %1338 = vmatprep.subr.bf16.mxu0 %v1337_v10 }
  0xf3   :  { %1340 = vmatpush3.bf16.msra.mxu0 %v1337_v10 }
  0xf4   :  { %v197_v3 = vpop.permute.xlu1 %196 }
  0xf5   :  { %v233_v53 = vmul.f32 %v1701_v56, %v197_v3 }
  0xf7   :  { %v249_v61 = vadd.f32 %v233_v53, %v149_v54 }
  0xf9   :  { %v297_v13 = vpop.permute.xlu1 %296 }
  0xfa   :  { %v333_v39 = vmul.f32 %v1709_v62, %v297_v13 }
  0xfc   :  { %v349_v63 = vadd.f32 %v333_v39, %v249_v61 }
  0xfd   :  { %v301_v16 = vpop.permute.xlu1 %300 }
  0xfe   :  { %v334_v0 = vmul.f32 %v1709_v62, %v301_v16  ;;  %v445_v6 = vadd.f32 %v408_v5, %v349_v63  ;;  %v154_v16 = vmul.f32 %v1703_v58, %v133_v31  ;;  %v479_v31 = vld [vmem:[%s1972_s2 + $0x60] sm:$0xff] }
 0x100   :  { %v350_v8 = vadd.f32 %v334_v0, %v250_v49  ;;  %v461_v10 = vmax.f32 %v445_v6, 0.0  ;;  %v469_v6 = vld [vmem:[%s1972_s2 + $0x10] sm:$0xff] }
 0x102   :  { %v403_v7 = vpop.permute.xlu1 %402 }
 0x103   :  { %v444_v36 = vadd.f32 %v403_v7, %v348_v47  ;;  %v418_v7 = vpop.permute.xlu0 %417 }
 0x105   :  { %v460_v51 = vmax.f32 %v444_v36, 0.0 }
 0x106   :  { %v118_v52 = vpop.permute.xlu1 %117 }
 0x107   :  { %v1341_v41 = vpack.c.bf16 %v460_v51, %v459_v42  ;;  %v151_v32 = vmul.f32 %v1703_v58, %v118_v52  ;;  %v252_v42 = vadd.f32 %v236_v38, %v152_v44  ;;  %v254_v51 = vadd.f32 %v238_v59, %v154_v16  ;;  %v433_v35 = vpop.permute.xlu0 %432 }
 0x108   :  { %v1461_v38 = vmov 3  }
 0x109   :  { %1342 = vmatprep.subr.bf16.mxu0 %v1341_v41  ;;  %1424 = vset.pattern.permute.xlu1 %v1461_v38 }
 0x10a   :  { %1344 = vmatpush3.bf16.msra.mxu0 %v1341_v41  ;;  %1425 = vset.pattern.permute.xlu0 %v1461_v38 }
 0x10b   :  { %v205_v37 = vpop.permute.xlu1 %204  ;;  %1015 = vperm.xlu1 %1424, %v1547_v14   ;;  %1019 = vperm.xlu0 %1425, %v1557_v15  }
 0x10c   :  { %v235_v28 = vmul.f32 %v1701_v56, %v205_v37 }
 0x10e   :  { %v251_v34 = vadd.f32 %v235_v28, %v151_v32  ;;  %v478_v28 = vld [vmem:[%s1972_s2 + $0x58] sm:$0xff]  ;;  %v480_v32 = vld [vmem:[%s1972_s2 + $0x68] sm:$0xff] }
 0x10f   :  { %1426 = vset.pattern.permute.xlu1 %v1458_v1  ;;  %1031 = vperm.xlu0 %1425, %v1573_v18  }
 0x110   :  { %v305_v57 = vpop.permute.xlu1 %304  ;;  %758 = vperm.xlu1 %1426, %v1595_v21  }
 0x111   :  { %v335_v13 = vmul.f32 %v1709_v62, %v305_v57 }
 0x113   :  { %v351_v48 = vadd.f32 %v335_v13, %v251_v34  ;;  %v481_v13 = vld [vmem:[%s1972_s2 + $0x70] sm:$0xff]  ;;  %v1133_v34 = vld [vmem:[%s1972_s2 + $0x80] sm:$0xff]  ;;  %1043 = vperm.xlu0 %1425, %v1637_v27  }
 0x114   :  { %v309_v2 = vpop.permute.xlu1 %308  ;;  %1301 = vmatprep.mubr.f32.mxu1 %v1133_v34  ;;  %1427 = vset.pattern.permute.xlu1 %v1461_v38 }
 0x115   :  { %v336_v4 = vmul.f32 %v1709_v62, %v309_v2  ;;  %v447_v41 = vadd.f32 %v418_v7, %v351_v48  ;;  %1023 = vperm.xlu1 %1427, %v1567_v17  }
 0x117   :  { %v352_v53 = vadd.f32 %v336_v4, %v252_v42  ;;  %v463_v45 = vmax.f32 %v447_v41, 0.0  ;;  %1431 = vset.pattern.permute.xlu0 %v1458_v1 }
 0x118   :  { %726 = vperm.xlu0 %1431, %v1547_v14  }
 0x119   :  { %v413_v9 = vpop.permute.xlu1 %412  ;;  %1027 = vperm.xlu1 %1427, %v1579_v19  }
 0x11a   :  { %v446_v40 = vadd.f32 %v413_v9, %v350_v8  ;;  %v470_v8 = vld [vmem:[%s1972_s2 + $0x18] sm:$0xff]  ;;  %v471_v9 = vld [vmem:[%s1972_s2 + $0x20] sm:$0xff] }
 0x11c   :  { %v462_v3 = vmax.f32 %v446_v40, 0.0  ;;  %v472_v40 = vld [vmem:[%s1972_s2 + $0x28] sm:$0xff]  ;;  %738 = vperm.xlu0 %1431, %v1579_v19  }
 0x11d   :  { %v128_v12 = vpop.permute.xlu1 %127  ;;  %1428 = vset.pattern.permute.xlu1 %v1458_v1 }
 0x11e   :  { %v1345_v24 = vpack.c.bf16 %v462_v3, %v461_v10  ;;  %v153_v50 = vmul.f32 %v1703_v58, %v128_v12  ;;  %v473_v10 = vld [vmem:[%s1972_s2 + $0x30] sm:$0xff]  ;;  %v474_v3 = vld [vmem:[%s1972_s2 + $0x38] sm:$0xff]  ;;  %v475_v12 = vld [vmem:[%s1972_s2 + $0x40] sm:$0xff]  ;;  %766 = vperm.xlu1 %1428, %v1603_v22  }
 0x120   :  { %1346 = vmatprep.subr.bf16.mxu0 %v1345_v24  ;;  %746 = vperm.xlu0 %1431, %v1608_v23  }
 0x121   :  { %1348 = vmatpush3.bf16.msra.mxu0 %v1345_v24  ;;  %v476_v24 = vld [vmem:[%s1972_s2 + $0x48] sm:$0xff] }
 0x122   :  { %v213_v46 = vpop.permute.xlu1 %212  ;;  %770 = vperm.xlu1 %1428, %v1684_v43  }
 0x123   :  { %v237_v52 = vmul.f32 %v1701_v56, %v213_v46  ;;  %v477_v46 = vld [vmem:[%s1972_s2 + $0x50] sm:$0xff] }
 0x124   :  { %754 = vperm.xlu0 %1431, %v1637_v27  }
 0x125   :  { %v253_v39 = vadd.f32 %v237_v52, %v153_v50 }
 0x126   :  { %1429 = vset.pattern.permute.xlu1 %v1461_v38 }
 0x127   :  { %v313_v33 = vpop.permute.xlu1 %312  ;;  %1035 = vperm.xlu1 %1429, %v1608_v23  }
 0x128   :  { %v337_v55 = vmul.f32 %v1709_v62, %v313_v33  ;;  %v482_v33 = vld [vmem:[%s1972_s2 + $0x78] sm:$0xff]  ;;  %762 = vperm.xlu0 %1431, %v1661_v30  }
 0x12a   :  { %v353_v63 = vadd.f32 %v337_v55, %v253_v39 }
 0x12b   :  { %v317_v47 = vpop.permute.xlu1 %316  ;;  %1039 = vperm.xlu1 %1429, %v1587_v20  }
 0x12c   :  { %v338_v36 = vmul.f32 %v1709_v62, %v317_v47  ;;  %v468_v62 = vld [vmem:[%s1972_s2 + $0x8] sm:$0xff]  ;;  %774 = vperm.xlu0 %1431, %v1620_v25  }
 0x12e   :  { %v354_v37 = vadd.f32 %v338_v36, %v254_v51 }
 0x12f   :  { %1430 = vset.pattern.permute.xlu1 %v1458_v1  ;;  %v489_v1 = vpop.permute.xlu0 %488 }
 0x130   :  { %v423_v54 = vpop.permute.xlu1 %422  ;;  %v450_v60 = vadd.f32 %v433_v35, %v354_v37  ;;  %778 = vperm.xlu1 %1430, %v1719_v11   ;;  %786 = vperm.xlu0 %1431, %v1627_v26  }
 0x131   :  { %v448_v57 = vadd.f32 %v423_v54, %v352_v53 }
 0x132   :  { %v466_v56 = vmax.f32 %v450_v60, 0.0 }
 0x133   :  { %v464_v61 = vmax.f32 %v448_v57, 0.0  ;;  %v501_v19 = vpop.permute.xlu0 %500 }
 0x134   :  { %v428_v0 = vpop.permute.xlu1 %427  ;;  %782 = vperm.xlu1 %1430, %v1654_v29   ;;  %1433 = vset.pattern.permute.xlu0 %v1461_v38 }
 0x135   :  { %v1349_v2 = vpack.c.bf16 %v464_v61, %v463_v45  ;;  %v449_v49 = vadd.f32 %v428_v0, %v353_v63  ;;  %1059 = vperm.xlu0 %1433, %v1684_v43  }
 0x137   :  { %v465_v5 = vmax.f32 %v449_v49, 0.0  ;;  %1350 = vmatprep.subr.bf16.mxu0 %v1349_v2 }
 0x138   :  { %1352 = vmatpush3.bf16.msra.mxu0 %v1349_v2  ;;  %1432 = vset.pattern.permute.xlu1 %v1461_v38 }
 0x139   :  { %v1353_v58 = vpack.c.bf16 %v466_v56, %v465_v5  ;;  %v485_v14 = vpop.permute.xlu1 %484  ;;  %1047 = vperm.xlu1 %1432, %v1595_v21   ;;  %1071 = vperm.xlu0 %1433, %v1654_v29   ;;  %v509_v29 = vpop.permute.xlu0 %508 }
 0x13b   :  { %1354 = vmatprep.subr.bf16.mxu0 %v1353_v58 }
 0x13c   :  { %1356 = vmatpush3.bf16.msra.mxu0 %v1353_v58 }
 0x13d   :  { %v493_v15 = vpop.permute.xlu1 %492  ;;  %1051 = vperm.xlu1 %1432, %v1661_v30   ;;  %v517_v50 = vpop.permute.xlu0 %516 }
 0x13f   :  { %1246 = vmatmul.mubr.f32.vlgmr.msra.gmra.mrb[0].mxu0 %v468_v62 }
 0x140   :  { %1248 = vmatprep.mubr.f32.mxu0 %v469_v6 }
 0x141   :  { %v497_v17 = vpop.permute.xlu1 %496  ;;  %1055 = vperm.xlu1 %1432, %v1603_v22   ;;  %v525_v61 = vpop.permute.xlu0 %524 }
 0x143   :  { %1249 = vmatmul.mubr.f32.gmra.mrb[2].mxu0 %v470_v8 }
 0x144   :  { %1251 = vmatprep.mubr.f32.mxu0 %v471_v9 }
 0x145   :  { %v505_v18 = vpop.permute.xlu1 %504  ;;  %1063 = vperm.xlu1 %1432, %v1620_v25  }
 0x147   :  { %1252 = vmatmul.mubr.f32.gmra.mrb[4].mxu0 %v472_v40 }
 0x148   :  { %1254 = vmatprep.mubr.f32.mxu0 %v473_v10  ;;  %v533_v10 = vpop.permute.xlu0 %532 }
 0x149   :  { %v513_v44 = vpop.permute.xlu1 %512  ;;  %1067 = vperm.xlu1 %1432, %v1719_v11  }
 0x14b   :  { %1255 = vmatmul.mubr.f32.gmra.mrb[6].mxu0 %v474_v3 }
 0x14c   :  { %1257 = vmatprep.mubr.f32.mxu0 %v475_v12 }
 0x14d   :  { %1075 = vperm.xlu1 %1432, %v1627_v26   ;;  %v521_v51 = vpop.permute.xlu1 %520 }
 0x14f   :  { %1258 = vmatmul.mubr.f32.gmra.mrb[8].mxu0 %v476_v24 }
 0x150   :  { %1260 = vmatprep.mubr.f32.mxu0 %v477_v46 }
 0x151   :  { %v529_v60 = vpop.permute.xlu1 %528 }
 0x153   :  { %1261 = vmatmul.mubr.f32.gmra.mrb[10].mxu0 %v478_v28 }
 0x154   :  { %1263 = vmatprep.mubr.f32.mxu0 %v479_v31 }
 0x155   :  { %v537_v8 = vpop.permute.xlu1 %536 }
 0x157   :  { %1264 = vmatmul.mubr.f32.gmra.mrb[12].mxu0 %v480_v32 }
 0x158   :  { %1266 = vmatprep.mubr.f32.mxu0 %v481_v13 }
 0x15b   :  { %1267 = vmatmul.mubr.f32.gmra.mrb[14].mxu0 %v482_v33  ;;  %v545_v33 = vpop.permute.xlu1 %544 }
 0x212   :  { %v1247_v20 = vpop.f32.mrb[0].mxu0 }
 0x213   :  { %v619_v23 = vadd.f32 %v1247_v20, %v489_v1  ;;  %v613_v27 = vpop.f32.mrb[1].mxu0 }
 0x214   :  { %v614_v43 = vadd.f32 %v613_v27, %v485_v14  ;;  %v541_v14 = vpop.permute.xlu0 %540  ;;  %v1134_v27 = vld [vmem:[%s1972_s2 + $0x88] sm:$0xff] }
 0x215   :  { %v693_v59 = vmax.f32 %v619_v23, 0.0 }
 0x216   :  { %v692_v16 = vmax.f32 %v614_v43, 0.0  ;;  %v1250_v21 = vpop.f32.mrb[2].mxu0  ;;  %v1135_v43 = vld [vmem:[%s1972_s2 + $0x90] sm:$0xff] }
 0x217   :  { %v629_v48 = vadd.f32 %v1250_v21, %v497_v17  ;;  %v623_v30 = vpop.f32.mrb[3].mxu0  ;;  %v1139_v21 = vld [vmem:[%s1972_s2 + $0xb0] sm:$0xff] }
 0x218   :  { %v624_v4 = vadd.f32 %v623_v30, %v493_v15  ;;  %v1357_v47 = vpack.c.bf16 %v693_v59, %v692_v16  ;;  %v1136_v59 = vld [vmem:[%s1972_s2 + $0x98] sm:$0xff]  ;;  %v1138_v16 = vld [vmem:[%s1972_s2 + $0xa8] sm:$0xff] }
 0x219   :  { %v695_v22 = vmax.f32 %v629_v48, 0.0  ;;  %v1141_v48 = vld [vmem:[%s1972_s2 + $0xc0] sm:$0xff]  ;;  %v1142_v30 = vld [vmem:[%s1972_s2 + $0xc8] sm:$0xff] }
 0x21a   :  { %v694_v7 = vmax.f32 %v624_v4, 0.0  ;;  %v1253_v36 = vpop.f32.mrb[4].mxu0  ;;  %1358 = vmatprep.subr.bf16.mxu1 %v1357_v47  ;;  %v1143_v4 = vld [vmem:[%s1972_s2 + $0xd0] sm:$0xff] }
 0x21b   :  { %v639_v25 = vadd.f32 %v1253_v36, %v505_v18  ;;  %v633_v42 = vpop.f32.mrb[5].mxu0  ;;  %1360 = vmatpush3.bf16.msra.mxu1 %v1357_v47  ;;  %v1144_v47 = vld [vmem:[%s1972_s2 + $0xd8] sm:$0xff]  ;;  %v1147_v36 = vld [vmem:[%s1972_s2 + $0xf0] sm:$0xff] }
 0x21c   :  { %v1361_v52 = vpack.c.bf16 %v695_v22, %v694_v7  ;;  %v634_v41 = vadd.f32 %v633_v42, %v501_v19  ;;  %v1145_v22 = vld [vmem:[%s1972_s2 + $0xe0] sm:$0xff]  ;;  %v1146_v7 = vld [vmem:[%s1972_s2 + $0xe8] sm:$0xff]  ;;  %v731_v42 = vpop.permute.xlu1 %730 }
 0x21d   :  { %v697_v55 = vmax.f32 %v639_v25, 0.0  ;;  %v1148_v25 = vld [vmem:[%s1972_s2 + $0xf8] sm:$0xff] }
 0x21e   :  { %v696_v11 = vmax.f32 %v634_v41, 0.0  ;;  %v1256_v37 = vpop.f32.mrb[6].mxu0  ;;  %1362 = vmatprep.subr.bf16.mxu1 %v1361_v52 }
 0x21f   :  { %v649_v53 = vadd.f32 %v1256_v37, %v513_v44  ;;  %v643_v54 = vpop.f32.mrb[7].mxu0  ;;  %1364 = vmatpush3.bf16.msra.mxu1 %v1361_v52  ;;  %v1137_v44 = vld [vmem:[%s1972_s2 + $0xa0] sm:$0xff] }
 0x220   :  { %v1365_v39 = vpack.c.bf16 %v697_v55, %v696_v11  ;;  %v644_v57 = vadd.f32 %v643_v54, %v509_v29  ;;  %v1140_v29 = vld [vmem:[%s1972_s2 + $0xb8] sm:$0xff] }
 0x221   :  { %v699_v35 = vmax.f32 %v649_v53, 0.0  ;;  %v1020_v53 = vpop.permute.xlu0 %1019 }
 0x222   :  { %v698_v45 = vmax.f32 %v644_v57, 0.0  ;;  %v1259_v26 = vpop.f32.mrb[8].mxu0  ;;  %1366 = vmatprep.subr.bf16.mxu1 %v1365_v39 }
 0x223   :  { %v659_v63 = vadd.f32 %v1259_v26, %v521_v51  ;;  %v653_v0 = vpop.f32.mrb[9].mxu0  ;;  %1368 = vmatpush3.bf16.msra.mxu1 %v1365_v39  ;;  %v735_v51 = vpop.permute.xlu1 %734 }
 0x224   :  { %v1369_v2 = vpack.c.bf16 %v699_v35, %v698_v45  ;;  %v654_v49 = vadd.f32 %v653_v0, %v517_v50 }
 0x225   :  { %v701_v5 = vmax.f32 %v659_v63, 0.0  ;;  %v1927_v39 = vpop.permute.xlu0 %1031 }
 0x226   :  { %v700_v56 = vmax.f32 %v654_v49, 0.0  ;;  %v1262_v58 = vpop.f32.mrb[10].mxu0  ;;  %1370 = vmatprep.subr.bf16.mxu1 %v1369_v2 }
 0x227   :  { %v669_v62 = vadd.f32 %v1262_v58, %v529_v60  ;;  %v663_v6 = vpop.f32.mrb[11].mxu0  ;;  %1372 = vmatpush3.bf16.msra.mxu1 %v1369_v2  ;;  %v743_v52 = vpop.permute.xlu1 %742 }
 0x228   :  { %v1373_v9 = vpack.c.bf16 %v701_v5, %v700_v56  ;;  %v664_v40 = vadd.f32 %v663_v6, %v525_v61 }
 0x229   :  { %v703_v3 = vmax.f32 %v669_v62, 0.0  ;;  %v1931_v35 = vpop.permute.xlu0 %1043 }
 0x22a   :  { %v702_v12 = vmax.f32 %v664_v40, 0.0  ;;  %v1265_v24 = vpop.f32.mrb[12].mxu0  ;;  %1374 = vmatprep.subr.bf16.mxu1 %v1373_v9 }
 0x22b   :  { %v679_v46 = vadd.f32 %v1265_v24, %v537_v8  ;;  %v673_v28 = vpop.f32.mrb[13].mxu0  ;;  %1376 = vmatpush3.bf16.msra.mxu1 %v1373_v9  ;;  %v751_v41 = vpop.permute.xlu1 %750 }
 0x22c   :  { %v1377_v31 = vpack.c.bf16 %v703_v3, %v702_v12  ;;  %v674_v32 = vadd.f32 %v673_v28, %v533_v10 }
 0x22d   :  { %v705_v13 = vmax.f32 %v679_v46, 0.0  ;;  %v727_v45 = vpop.permute.xlu0 %726 }
 0x22e   :  { %v704_v34 = vmax.f32 %v674_v32, 0.0  ;;  %v1268_v38 = vpop.f32.mrb[14].mxu0  ;;  %1378 = vmatprep.subr.bf16.mxu1 %v1377_v31 }
 0x22f   :  { %v689_v15 = vadd.f32 %v1268_v38, %v545_v33  ;;  %v683_v17 = vpop.f32.mrb[15].mxu0  ;;  %1380 = vmatpush3.bf16.msra.mxu1 %v1377_v31  ;;  %v1016_v50 = vpop.permute.xlu1 %1015 }
 0x230   :  { %v1381_v1 = vpack.c.bf16 %v705_v13, %v704_v34  ;;  %v684_v18 = vadd.f32 %v683_v17, %v541_v14 }
 0x231   :  { %v707_v19 = vmax.f32 %v689_v15, 0.0  ;;  %v739_v61 = vpop.permute.xlu0 %738 }
 0x232   :  { %v706_v20 = vmax.f32 %v684_v18, 0.0  ;;  %1382 = vmatprep.subr.bf16.mxu1 %v1381_v1 }
 0x233   :  { %1384 = vmatpush3.bf16.msra.mxu1 %v1381_v1  ;;  %v1919_v55 = vpop.permute.xlu1 %758 }
 0x234   :  { %v1385_v23 = vpack.c.bf16 %v707_v19, %v706_v20 }
 0x235   :  { %v747_v58 = vpop.permute.xlu0 %746 }
 0x236   :  { %1386 = vmatprep.subr.bf16.mxu1 %v1385_v23 }
 0x237   :  { %1388 = vmatpush3.bf16.msra.mxu1 %v1385_v23  ;;  %v1921_v11 = vpop.permute.xlu1 %1023 }
 0x239   :  { %v755_v14 = vpop.permute.xlu0 %754 }
 0x23a   :  { %1302 = vmatmul.mubr.f32.vlgmr.msra.gmra.mrb[0].mxu1 %v1134_v27 }
 0x23b   :  { %1304 = vmatprep.mubr.f32.mxu1 %v1135_v43  ;;  %v1923_v37 = vpop.permute.xlu1 %1027 }
 0x23e   :  { %1305 = vmatmul.mubr.f32.gmra.mrb[2].mxu1 %v1136_v59 }
 0x23f   :  { %1307 = vmatprep.mubr.f32.mxu1 %v1137_v44  ;;  %v1925_v54 = vpop.permute.xlu1 %766 }
 0x242   :  { %1308 = vmatmul.mubr.f32.gmra.mrb[4].mxu1 %v1138_v16 }
 0x243   :  { %1310 = vmatprep.mubr.f32.mxu1 %v1139_v21  ;;  %v1929_v57 = vpop.permute.xlu1 %770 }
 0x246   :  { %1311 = vmatmul.mubr.f32.gmra.mrb[6].mxu1 %v1140_v29 }
 0x247   :  { %1313 = vmatprep.mubr.f32.mxu1 %v1141_v48  ;;  %v1933_v60 = vpop.permute.xlu1 %1035 }
 0x24a   :  { %1314 = vmatmul.mubr.f32.gmra.mrb[8].mxu1 %v1142_v30 }
 0x24b   :  { %1316 = vmatprep.mubr.f32.mxu1 %v1143_v4  ;;  %v1935_v26 = vpop.permute.xlu1 %1039 }
 0x24e   :  { %1317 = vmatmul.mubr.f32.gmra.mrb[10].mxu1 %v1144_v47 }
 0x24f   :  { %1319 = vmatprep.mubr.f32.mxu1 %v1145_v22  ;;  %v1937_v49 = vpop.permute.xlu1 %778 }
 0x252   :  { %1320 = vmatmul.mubr.f32.gmra.mrb[12].mxu1 %v1146_v7 }
 0x253   :  { %1322 = vmatprep.mubr.f32.mxu1 %v1147_v36  ;;  %v1939_v46 = vpop.permute.xlu1 %782 }
 0x256   :  { %1323 = vmatmul.mubr.f32.gmra.mrb[14].mxu1 %v1148_v25 }
 0x257   :  { %v1941_v4 = vpop.permute.xlu1 %1047 }
 0x30d   :  { %v1303_v63 = vpop.f32.mrb[0].mxu1 }
 0x30e   :  { %v861_v0 = vadd.f32 %v1303_v63, %v731_v42  ;;  %v855_v2 = vpop.f32.mrb[1].mxu1 }
 0x30f   :  { %v856_v5 = vadd.f32 %v855_v2, %v727_v45 }
 0x310   :  { %v935_v56 = vadd.f32 3.0, %v861_v0 }
 0x311   :  { %v934_v62 = vadd.f32 3.0, %v856_v5  ;;  %v1306_v6 = vpop.f32.mrb[2].mxu1 }
 0x312   :  { %v951_v8 = vmax.f32 %v935_v56, 0.0  ;;  %v871_v9 = vadd.f32 %v1306_v6, %v739_v61  ;;  %v865_v40 = vpop.f32.mrb[3].mxu1 }
 0x313   :  { %v950_v10 = vmax.f32 %v934_v62, 0.0  ;;  %v866_v3 = vadd.f32 %v865_v40, %v735_v51  ;;  %v763_v51 = vpop.permute.xlu0 %762 }
 0x314   :  { %v967_v12 = vmin.f32 %v951_v8, 6.0  ;;  %v937_v24 = vadd.f32 3.0, %v871_v9 }
 0x315   :  { %v966_v28 = vmin.f32 %v950_v10, 6.0  ;;  %v936_v31 = vadd.f32 3.0, %v866_v3  ;;  %v1309_v32 = vpop.f32.mrb[4].mxu1 }
 0x316   :  { %v983_v13 = vmul.f32 %v967_v12, %v861_v0  ;;  %v953_v33 = vmax.f32 %v937_v24, 0.0  ;;  %v881_v34 = vadd.f32 %v1309_v32, %v747_v58  ;;  %v875_v38 = vpop.f32.mrb[5].mxu1 }
 0x317   :  { %v982_v15 = vmul.f32 %v966_v28, %v856_v5  ;;  %v952_v17 = vmax.f32 %v936_v31, 0.0  ;;  %v876_v1 = vadd.f32 %v875_v38, %v743_v52 }
 0x318   :  { %v999_v18 = vmul.f32 0.16666667, %v983_v13  ;;  %v969_v19 = vmin.f32 %v953_v33, 6.0  ;;  %v939_v20 = vadd.f32 3.0, %v881_v34 }
 0x319   :  { %v998_v23 = vmul.f32 0.16666667, %v982_v15  ;;  %v968_v27 = vmin.f32 %v952_v17, 6.0  ;;  %v938_v43 = vadd.f32 3.0, %v876_v1  ;;  %v1312_v59 = vpop.f32.mrb[6].mxu1 }
 0x31a   :  { %v1079_v44 = vmul.f32 %v1020_v53, %v999_v18  ;;  %v985_v16 = vmul.f32 %v969_v19, %v871_v9  ;;  %v955_v21 = vmax.f32 %v939_v20, 0.0  ;;  %v891_v29 = vadd.f32 %v1312_v59, %v755_v14  ;;  %v885_v48 = vpop.f32.mrb[7].mxu1 }
 0x31b   :  { %v1078_v30 = vmul.f32 %v1016_v50, %v998_v23  ;;  %v984_v47 = vmul.f32 %v968_v27, %v866_v3  ;;  %v954_v22 = vmax.f32 %v938_v43, 0.0  ;;  %v886_v7 = vadd.f32 %v885_v48, %v751_v41  ;;  %v1052_v3 = vpop.permute.xlu1 %1051 }
 0x31c   :  { %v1001_v36 = vmul.f32 0.16666667, %v985_v16  ;;  %v971_v25 = vmin.f32 %v955_v21, 6.0  ;;  %v941_v42 = vadd.f32 3.0, %v891_v29 }
 0x31d   :  { %v1094_v52 = vadd.f32 %v1079_v44, %v1078_v30  ;;  %v1000_v45 = vmul.f32 0.16666667, %v984_v47  ;;  %v970_v61 = vmin.f32 %v954_v22, 6.0  ;;  %v940_v63 = vadd.f32 3.0, %v886_v7  ;;  %v1315_v0 = vpop.f32.mrb[8].mxu1 }
 0x31e   :  { %v987_v53 = vmul.f32 %v971_v25, %v881_v34  ;;  %v957_v2 = vmax.f32 %v941_v42, 0.0  ;;  %v901_v5 = vadd.f32 %v1315_v0, %v763_v51  ;;  %v895_v56 = vpop.f32.mrb[9].mxu1  ;;  %v1081_v41 = vmul.f32 %v1923_v37, %v1001_v36  ;;  %v775_v37 = vpop.permute.xlu0 %774 }
 0x31f   :  { %v1080_v50 = vmul.f32 %v1921_v11, %v1000_v45  ;;  %v986_v58 = vmul.f32 %v970_v61, %v876_v1  ;;  %v956_v62 = vmax.f32 %v940_v63, 0.0  ;;  %v896_v6 = vadd.f32 %v895_v56, %v1919_v55 }
 0x320   :  { %v1003_v8 = vmul.f32 0.16666667, %v987_v53  ;;  %v973_v9 = vmin.f32 %v957_v2, 6.0  ;;  %v943_v40 = vadd.f32 3.0, %v901_v5 }
 0x321   :  { %v1095_v10 = vadd.f32 %v1094_v52, %v1080_v50  ;;  %v1002_v12 = vmul.f32 0.16666667, %v986_v58  ;;  %v972_v24 = vmin.f32 %v956_v62, 6.0  ;;  %v942_v28 = vadd.f32 3.0, %v896_v6  ;;  %v1318_v31 = vpop.f32.mrb[10].mxu1 }
 0x322   :  { %v989_v32 = vmul.f32 %v973_v9, %v891_v29  ;;  %v959_v13 = vmax.f32 %v943_v40, 0.0  ;;  %v911_v33 = vadd.f32 %v1318_v31, %v1929_v57  ;;  %v905_v11 = vpop.f32.mrb[11].mxu1  ;;  %v1083_v15 = vmul.f32 %v1933_v60, %v1003_v8  ;;  %v787_v52 = vpop.permute.xlu0 %786 }
 0x323   :  { %v1082_v34 = vmul.f32 %v1927_v39, %v1002_v12  ;;  %v1096_v38 = vadd.f32 %v1095_v10, %v1081_v41  ;;  %v988_v55 = vmul.f32 %v972_v24, %v886_v7  ;;  %v958_v14 = vmax.f32 %v942_v28, 0.0  ;;  %v1056_v39 = vpop.permute.xlu1 %1055 }
 0x324   :  { %v975_v17 = vmin.f32 %v959_v13, 6.0  ;;  %v945_v1 = vadd.f32 3.0, %v911_v33  ;;  %v906_v18 = vadd.f32 %v905_v11, %v1925_v54  ;;  %v1005_v20 = vmul.f32 0.16666667, %v989_v32 }
 0x325   :  { %v1097_v19 = vadd.f32 %v1096_v38, %v1082_v34  ;;  %v1004_v23 = vmul.f32 0.16666667, %v988_v55  ;;  %v974_v27 = vmin.f32 %v958_v14, 6.0  ;;  %v1321_v43 = vpop.f32.mrb[12].mxu1 }
 0x326   :  { %v991_v59 = vmul.f32 %v975_v17, %v901_v5  ;;  %v961_v57 = vmax.f32 %v945_v1, 0.0  ;;  %v944_v44 = vadd.f32 3.0, %v906_v18  ;;  %v915_v16 = vpop.f32.mrb[13].mxu1  ;;  %v921_v60 = vadd.f32 %v1321_v43, %v1937_v49  ;;  %v1060_v12 = vpop.permute.xlu0 %1059 }
 0x327   :  { %v1084_v21 = vmul.f32 %v1935_v26, %v1004_v23  ;;  %v1098_v29 = vadd.f32 %v1097_v19, %v1083_v15  ;;  %v990_v48 = vmul.f32 %v974_v27, %v896_v6  ;;  %v916_v54 = vadd.f32 %v915_v16, %v775_v37 }
 0x328   :  { %v1007_v30 = vmul.f32 0.16666667, %v991_v59  ;;  %v977_v47 = vmin.f32 %v961_v57, 6.0  ;;  %v960_v22 = vmax.f32 %v944_v44, 0.0  ;;  %v1085_v7 = vmul.f32 %v1931_v35, %v1005_v20  ;;  %v1064_v35 = vpop.permute.xlu1 %1063 }
 0x329   :  { %v1099_v36 = vadd.f32 %v1098_v29, %v1084_v21  ;;  %v1006_v25 = vmul.f32 0.16666667, %v990_v48  ;;  %v947_v42 = vadd.f32 3.0, %v921_v60  ;;  %v1324_v51 = vpop.f32.mrb[14].mxu1  ;;  %v946_v63 = vadd.f32 3.0, %v916_v54 }
 0x32a   :  { %v993_v45 = vmul.f32 %v977_v47, %v911_v33  ;;  %v976_v61 = vmin.f32 %v960_v22, 6.0  ;;  %v925_v0 = vpop.f32.mrb[15].mxu1  ;;  %v931_v49 = vadd.f32 %v1324_v51, %v787_v52  ;;  %v1087_v5 = vmul.f32 %v1052_v3, %v1007_v30  ;;  %v1072_v23 = vpop.permute.xlu0 %1071 }
 0x32b   :  { %v1086_v26 = vmul.f32 %v1941_v4, %v1006_v25  ;;  %v1100_v53 = vadd.f32 %v1099_v36, %v1085_v7  ;;  %v963_v2 = vmax.f32 %v947_v42, 0.0  ;;  %v962_v50 = vmax.f32 %v946_v63, 0.0 }
 0x32c   :  { %v992_v56 = vmul.f32 %v976_v61, %v906_v18  ;;  %v926_v58 = vadd.f32 %v925_v0, %v1939_v46  ;;  %v949_v41 = vadd.f32 3.0, %v931_v49  ;;  %v1009_v8 = vmul.f32 0.16666667, %v993_v45  ;;  %v1068_v55 = vpop.permute.xlu1 %1067 }
 0x32d   :  { %v1101_v62 = vadd.f32 %v1100_v53, %v1086_v26  ;;  %v979_v6 = vmin.f32 %v963_v2, 6.0  ;;  %v978_v40 = vmin.f32 %v962_v50, 6.0  ;;  %v1116_v30 = vstv %s1974_s4 }
 0x32e   :  { %v1008_v9 = vmul.f32 0.16666667, %v992_v56  ;;  %v948_v10 = vadd.f32 3.0, %v926_v58  ;;  %v965_v28 = vmax.f32 %v949_v41, 0.0  ;;  %v1089_v33 = vmul.f32 %v1060_v12, %v1009_v8 }
 0x32f   :  { %v995_v24 = vmul.f32 %v979_v6, %v921_v60  ;;  %v1102_v4 = vadd.f32 %v1101_v62, %v1087_v5  ;;  %v994_v32 = vmul.f32 %v978_v40, %v916_v54 }
 0x330   :  { %v1088_v31 = vmul.f32 %v1056_v39, %v1008_v9  ;;  %v964_v13 = vmax.f32 %v948_v10, 0.0  ;;  %v981_v3 = vmin.f32 %v965_v28, 6.0  ;;  %v1076_v59 = vpop.permute.xlu1 %1075 }
 0x331   :  { %v1011_v11 = vmul.f32 0.16666667, %v995_v24  ;;  %v1010_v34 = vmul.f32 0.16666667, %v994_v32 }
 0x332   :  { %v980_v46 = vmin.f32 %v964_v13, 6.0  ;;  %v1103_v38 = vadd.f32 %v1102_v4, %v1088_v31  ;;  %v997_v14 = vmul.f32 %v981_v3, %v931_v49 }
 0x333   :  { %v1090_v37 = vmul.f32 %v1064_v35, %v1010_v34  ;;  %v1091_v1 = vmul.f32 %v1068_v55, %v1011_v11 }
 0x334   :  { %v996_v15 = vmul.f32 %v980_v46, %v926_v58  ;;  %v1104_v17 = vadd.f32 %v1103_v38, %v1089_v33  ;;  %v1013_v18 = vmul.f32 0.16666667, %v997_v14 }
 0x336   :  { %v1105_v19 = vadd.f32 %v1104_v17, %v1090_v37  ;;  %v1012_v20 = vmul.f32 0.16666667, %v996_v15  ;;  %v1093_v57 = vmul.f32 %v1076_v59, %v1013_v18 }
 0x338   :  { %v1092_v27 = vmul.f32 %v1072_v23, %v1012_v20  ;;  %v1106_v43 = vadd.f32 %v1105_v19, %v1091_v1 }
 0x33a   :  { %v1107_v44 = vadd.f32 %v1106_v43, %v1092_v27 }
 0x33c   :  { %v1108_v16 = vadd.f32 %v1107_v44, %v1093_v57 }
 0x33e   :  { %v1109_v39 = vrot.slane %v1108_v16, 4 }
 0x340   :  { %v1110_v21 = vadd.f32 %v1109_v39, %v1108_v16 }
 0x342   :  { %v1111_v29 = vrot.slane %v1110_v21, 2 }
 0x344   :  { %v1112_v48 = vadd.f32 %v1111_v29, %v1110_v21 }
 0x346   :  { %v1113_v60 = vrot.slane %v1112_v48, 1 }
 0x348   :  { %v1114_v47 = vadd.f32 %v1113_v60, %v1112_v48 }
 0x34a   :  { %v1117_v22 = vadd.f32 %v1116_v30, %v1114_v47 }
 0x34c   :  { %1118 = vst [vmem:[#allocation3] sm:$0x1] %v1117_v22 }
 0x34d   :  { %1445 = shalt.err (!%p1442_p4)
}
 0x34e   :  { %s1446_s21 = scalar_lea.hbm %s1975_s5, 16 }
 0x34f   :  { %p1447_p5 = scmp.ne.s32.totalorder %s1975_s5, %s1446_s21  ;;  %p1450_p6 = scmp.lt.u32.totalorder %s1446_s21, %s1975_s5 }
 0x351   :  { %p1452_p7 = pnand %p1450_p6, %p1447_p5 }
 0x353   :  { %1455 = shalt.err (!%p1452_p7)
}
 0x354   :  { %1128 = dma.vmem_to_hbm [thread:$0]  %s1126_s16, 16, %s1975_s5, [#allocation4]  }
 0x355   :  { %1456 = dma.done.wait [#allocation4], 16  }
 0x356   :  { %1457 = vsyncadd [#allocation4], 4294967280 }
 0x357   :  { %1132 = vsyncpa [#allocation4], 1 }

</bundles_post_ra>
